<compile_context>
chip_gen: v7x
topology: tpu7x:2x2x1
jax: 0.10.0
libtpu: 0.0.40
codegen_flags: <defaults>
</compile_context>

<pallas_src>
import jax
import jax.numpy as jnp
from jax.experimental import pallas as pl
from jax.experimental.pallas import tpu as pltpu


# ----------------------------- tile selection ---------------------------------
def _choose_tiles(L, B, S, H, itemsize):
    """Pick (TB, TS) batch/seq tile sizes that stay within a cross-generation VMEM budget."""
    TB = B if B <= 8 else 8
    # ~4 MiB of layer blocks per grid step; Pallas double-buffers, so ~8 MiB resident,
    # which is safe under the scoped VMEM limits of v5e/v6e/v7x.
    budget = 4 * 1024 * 1024
    ts = budget // max(1, L * TB * H * itemsize)
    if ts >= S:
        TS = S
    else:
        # When the seq axis is tiled, the 2-D mask block puts seq on lanes, so a partial
        # seq tile must be a multiple of 128.
        TS = max(128, (ts // 128) * 128)
        if TS >= S:
            TS = S
    return TB, TS


# ----------------------------- Pallas kernels ---------------------------------
def _make_aver_kernel(L, S_total, TS, needs_seq_mask):
    inv_L = 1.0 / L

    def kernel(*refs):
        layer_refs = refs[:L]
        m_ref, o_ref = refs[L], refs[L + 1]
        acc_ref, den_ref = refs[L + 2], refs[L + 3]
        ts = pl.program_id(1)

        @pl.when(ts == 0)
        def _init():
            acc_ref[...] = jnp.zeros_like(acc_ref)
            den_ref[...] = jnp.zeros_like(den_ref)

        # Sum of selected layers in f32 (accurate for bf16 inputs; the 1/L scale is
        # deferred to the finalize step).
        x = layer_refs[0][...].astype(jnp.float32)
        for r in layer_refs[1:]:
            x = x + r[...].astype(jnp.float32)

        m = m_ref[...].astype(jnp.float32)  # (TB, TS), lane-dense
        if needs_seq_mask:  # static: only traced when the last seq tile is ragged
            pos = ts * TS + jax.lax.broadcasted_iota(jnp.int32, m.shape, 1)
            valid = pos < S_total
            m = jnp.where(valid, m, 0.0)
            x = jnp.where(valid[:, :, None], x, 0.0)

        acc_ref[...] += jnp.sum(x * m[:, :, None], axis=1)   # (TB, H)
        den_ref[...] += jnp.sum(m, axis=1, keepdims=True)     # (TB, 1)

        @pl.when(ts == pl.num_programs(1) - 1)
        def _finalize():
            inv = pl.reciprocal(den_ref[...] + jnp.float32(0.01), approx=False)
            o_ref[...] = (acc_ref[...] * (jnp.float32(inv_L) * inv)).astype(o_ref.dtype)

    return kernel


def _make_max_kernel(L, S_total, TS, needs_seq_mask):
    inv_L = 1.0 / L

    def kernel(*refs):
        layer_refs = refs[:L]
        o_ref, acc_ref = refs[L], refs[L + 1]
        ts = pl.program_id(1)

        @pl.when(ts == 0)
        def _init():
            acc_ref[...] = jnp.full_like(acc_ref, -jnp.inf)

        x = layer_refs[0][...].astype(jnp.float32)
        for r in layer_refs[1:]:
            x = x + r[...].astype(jnp.float32)
        if needs_seq_mask:
            pos = ts * TS + jax.lax.broadcasted_iota(jnp.int32, x.shape[:2], 1)
            x = jnp.where((pos < S_total)[:, :, None], x, -jnp.inf)

        acc_ref[...] = jnp.maximum(acc_ref[...], jnp.max(x, axis=1))

        @pl.when(ts == pl.num_programs(1) - 1)
        def _finalize():
            # max(mean_L x) == mean_L is linear with positive 1/L => scale after the max.
            o_ref[...] = (acc_ref[...] * jnp.float32(inv_L)).astype(o_ref.dtype)

    return kernel


def _make_aver_all_kernel(L, S_total, TS, needs_seq_mask):
    inv = 1.0 / (L * S_total)

    def kernel(*refs):
        layer_refs = refs[:L]
        o_ref, acc_ref = refs[L], refs[L + 1]
        ts = pl.program_id(1)

        @pl.when(ts == 0)
        def _init():
            acc_ref[...] = jnp.zeros_like(acc_ref)

        x = layer_refs[0][...].astype(jnp.float32)
        for r in layer_refs[1:]:
            x = x + r[...].astype(jnp.float32)
        if needs_seq_mask:
            pos = ts * TS + jax.lax.broadcasted_iota(jnp.int32, x.shape[:2], 1)
            x = jnp.where((pos < S_total)[:, :, None], x, 0.0)

        acc_ref[...] += jnp.sum(x, axis=1)

        @pl.when(ts == pl.num_programs(1) - 1)
        def _finalize():
            o_ref[...] = (acc_ref[...] * jnp.float32(inv)).astype(o_ref.dtype)

    return kernel


def _make_cls_kernel(L):
    inv_L = 1.0 / L

    def kernel(*refs):
        layer_refs = refs[:L]
        o_ref = refs[L]
        x = layer_refs[0][...].astype(jnp.float32)
        for r in layer_refs[1:]:
            x = x + r[...].astype(jnp.float32)
        o_ref[...] = (x[:, 0, :] * jnp.float32(inv_L)).astype(o_ref.dtype)

    return kernel


# ------------------------------ wrapper ----------------------------------------
def _pool_over_layers(pooling, all_layers, layer_indices, attention_mask=None):
    selected = [all_layers[i] for i in layer_indices]
    L = len(selected)
    x0 = selected[0]
    B, S, H = x0.shape
    dtype = x0.dtype
    itemsize = jnp.dtype(dtype).itemsize
    out_shape = jax.ShapeDtypeStruct((B, H), dtype)

    if pooling == "cls":
        TB = B if B <= 8 else 8
        SB = S if S < 8 else 8  # only need token 0; read an aligned 8-token sublane slab
        x_spec = pl.BlockSpec((TB, SB, H), lambda b: (b, 0, 0))
        out_spec = pl.BlockSpec((TB, H), lambda b: (b, 0))
        return pl.pallas_call(
            _make_cls_kernel(L),
            out_shape=out_shape,
            grid=(pl.cdiv(B, TB),),
            in_specs=[x_spec] * L,
            out_specs=out_spec,
            compiler_params=pltpu.CompilerParams(
                dimension_semantics=("parallel",),
                vmem_limit_bytes=32 * 1024 * 1024,
            ),
        )(*selected)

    TB, TS = _choose_tiles(L, B, S, H, itemsize)
    needs_seq_mask = (S % TS) != 0
    grid = (pl.cdiv(B, TB), pl.cdiv(S, TS))

    x_spec = pl.BlockSpec((TB, TS, H), lambda b, s: (b, s, 0))
    out_spec = pl.BlockSpec((TB, H), lambda b, s: (b, 0))  # resident across the seq axis

    # Explicit VMEM limit: room for double-buffered blocks + scratch, capped for v7x (64 MiB).
    step_bytes = L * TB * TS * H * itemsize + TB * TS * 4 + TB * H * itemsize
    vmem_limit = int(min(max(3 * step_bytes, 32 * 1024 * 1024), 48 * 1024 * 1024))
    cparams = pltpu.CompilerParams(
        dimension_semantics=("parallel", "arbitrary"),
        vmem_limit_bytes=vmem_limit,
    )

    if pooling == "aver":
        mask2d = attention_mask.astype(jnp.float32)  # [B, S], lane-dense; f32 mask math
        m_spec = pl.BlockSpec((TB, TS), lambda b, s: (b, s))
        return pl.pallas_call(
            _make_aver_kernel(L, S, TS, needs_seq_mask),
            out_shape=out_shape,
            grid=grid,
            in_specs=[x_spec] * L + [m_spec],
            out_specs=out_spec,
            scratch_shapes=[pltpu.VMEM((TB, H), jnp.float32),
                            pltpu.VMEM((TB, 1), jnp.float32)],
            compiler_params=cparams,
        )(*selected, mask2d)

    if pooling == "max":
        # Note: matching the PyTorch reference, padding tokens participate in the max.
        return pl.pallas_call(
            _make_max_kernel(L, S, TS, needs_seq_mask),
            out_shape=out_shape,
            grid=grid,
            in_specs=[x_spec] * L,
            out_specs=out_spec,
            scratch_shapes=[pltpu.VMEM((TB, H), jnp.float32)],
            compiler_params=cparams,
        )(*selected)

    if pooling == "aver_all":
        return pl.pallas_call(
            _make_aver_all_kernel(L, S, TS, needs_seq_mask),
            out_shape=out_shape,
            grid=grid,
            in_specs=[x_spec] * L,
            out_specs=out_spec,
            scratch_shapes=[pltpu.VMEM((TB, H), jnp.float32)],
            compiler_params=cparams,
        )(*selected)

    raise ValueError(f"unsupported pooling mode for kernel path: {pooling}")


class LayerNPooling:
    """JAX/Pallas port of unsupervisedSTS LayerNPooling. No learned parameters."""

    def __init__(self, pooling, word_embedding_dimension, layers=2):
        self.config_keys = ["word_embedding_dimension"]
        self.word_embedding_dimension = word_embedding_dimension
        self.pooling_output_dimension = word_embedding_dimension
        self.pooling = pooling
        # The PyTorch code indexes the stacked [L, B, S, H] tensor with `layers` and takes
        # mean over dim 0, which is only well-formed when `layers` is a sequence of layer
        # indices; a bare int is normalized to the single-layer tuple (layers,).
        if isinstance(layers, int):
            layers = (layers,)
        self.layers = tuple(int(i) for i in layers)

    def __call__(self, features: dict) -> dict:
        if self.pooling in ("cls", "aver", "max", "aver_all"):
            mask = features["attention_mask"] if self.pooling == "aver" else None
            output_vector = _pool_over_layers(
                self.pooling, features["all_layer_embeddings"], self.layers, mask)
        else:
            output_vector = features["cls_token_embeddings"]
        features.update({"sentence_embedding": output_vector})
        return features

    def get_sentence_embedding_dimension(self):
        return self.pooling_output_dimension


# ------------------------------ test / demo -------------------------------------
def _reference(features, pooling, layer_indices):
    if pooling not in ("cls", "aver", "max", "aver_all"):
        return features["cls_token_embeddings"]
    stacked = jnp.stack([features["all_layer_embeddings"][i] for i in layer_indices])
    ff = jnp.mean(stacked.astype(jnp.float32), axis=0)
    if pooling == "cls":
        return ff[:, 0, :]
    if pooling == "aver":
        m = features["attention_mask"].astype(jnp.float32)
        num = jnp.sum(ff * m[:, :, None], axis=1)
        den = jnp.sum(m, axis=1, keepdims=True) + 0.01
        return num / den
    if pooling == "max":
        return jnp.max(ff, axis=1)
    return jnp.mean(ff, axis=1)  # aver_all


if __name__ == "__main__":
    B, S, H, NUM_LAYERS = 2, 8, 32, 4
    layer_indices = (1, 3)  # average transformer layers 1 and 3

    key = jax.random.PRNGKey(0)
    keys = jax.random.split(key, NUM_LAYERS)
    all_layer_embeddings = [
        jax.random.normal(k, (B, S, H), dtype=jnp.float32) for k in keys
    ]
    cls_token_embeddings = all_layer_embeddings[-1][:, 0, :]
    # Deterministic mask: batch 0 has 5 valid tokens, batch 1 has 8.
    attention_mask = jnp.array(
        [[1, 1, 1, 1, 1, 0, 0, 0],
         [1, 1, 1, 1, 1, 1, 1, 1]], dtype=jnp.float32)

    ok = True
    for mode in ["aver", "max", "aver_all", "cls", "unknown"]:
        features = {
            "all_layer_embeddings": all_layer_embeddings,
            "token_embeddings": all_layer_embeddings[-1],
            "cls_token_embeddings": cls_token_embeddings,
            "attention_mask": attention_mask,
        }
        module = LayerNPooling(mode, word_embedding_dimension=H, layers=layer_indices)
        out_features = module(features)
        got = jax.block_until_ready(out_features["sentence_embedding"])
        want = _reference(features, mode, layer_indices)
        if got.shape != want.shape:
            ok = False
        elif not jnp.allclose(got, want, atol=1e-5, rtol=1e-5):
            ok = False

    if ok:
        print("KERNEL_OK")
    else:
        raise SystemExit("mismatch vs reference")
</pallas_src>

<mosaic_0001>
module attributes {stable_mosaic.version = 11 : i64} {
  func.func @kernel(%arg0: i32, %arg1: i32, %arg2: memref<2x8x32xf32, #tpu.memory_space<vmem>>, %arg3: memref<2x8x32xf32, #tpu.memory_space<vmem>>, %arg4: memref<2x8xf32, #tpu.memory_space<vmem>>, %arg5: memref<2x32xf32, #tpu.memory_space<vmem>>, %arg6: memref<2x32xf32, #tpu.memory_space<vmem>>, %arg7: memref<2x1xf32, #tpu.memory_space<vmem>>) attributes {dimension_semantics = [#tpu.dimension_semantics<parallel>, #tpu.dimension_semantics<arbitrary>], iteration_bounds = array<i64: 1, 1>, scalar_prefetch = 0 : i64, scratch_operands = 2 : i64, tpu.core_type = #tpu.core_type<tc>, window_params = [{transform_indices = @transform_0, window_bounds = array<i64: 2, 8, 32>}, {transform_indices = @transform_1, window_bounds = array<i64: 2, 8, 32>}, {transform_indices = @transform_2, window_bounds = array<i64: 2, 8>}, {transform_indices = @transform_3, window_bounds = array<i64: 2, 32>}]} {
    %c0_i32 = arith.constant 0 : i32
    %0 = arith.cmpi eq, %arg1, %c0_i32 : i32
    %1 = arith.extui %0 : i1 to i32
    %c0_i32_0 = arith.constant 0 : i32
    %2 = arith.cmpi ne, %1, %c0_i32_0 : i32
    scf.if %2 {
      %cst_19 = arith.constant 0.000000e+00 : f32
      %22 = vector.broadcast %cst_19 : f32 to vector<2x32xf32>
      %c0_20 = arith.constant 0 : index
      %c0_21 = arith.constant 0 : index
      %23 = vector.load %arg6[%c0_20, %c0_21] : memref<2x32xf32, #tpu.memory_space<vmem>>, vector<2x32xf32>
      tpu.vector_store %arg6[%c0_20, %c0_21], %22 {strides = array<i32>} : memref<2x32xf32, #tpu.memory_space<vmem>>, vector<2x32xf32>,
      %cst_22 = arith.constant 0.000000e+00 : f32
      %24 = vector.broadcast %cst_22 : f32 to vector<2x1xf32>
      %c0_23 = arith.constant 0 : index
      %c0_24 = arith.constant 0 : index
      %25 = vector.load %arg7[%c0_23, %c0_24] : memref<2x1xf32, #tpu.memory_space<vmem>>, vector<2x1xf32>
      tpu.vector_store %arg7[%c0_23, %c0_24], %24 {strides = array<i32>} : memref<2x1xf32, #tpu.memory_space<vmem>>, vector<2x1xf32>,
    } else {
    }
    %c0 = arith.constant 0 : index
    %c0_1 = arith.constant 0 : index
    %c0_2 = arith.constant 0 : index
    %3 = vector.load %arg2[%c0, %c0_1, %c0_2] : memref<2x8x32xf32, #tpu.memory_space<vmem>>, vector<2x8x32xf32>
    %c0_3 = arith.constant 0 : index
    %c0_4 = arith.constant 0 : index
    %c0_5 = arith.constant 0 : index
    %4 = vector.load %arg3[%c0_3, %c0_4, %c0_5] : memref<2x8x32xf32, #tpu.memory_space<vmem>>, vector<2x8x32xf32>
    %5 = arith.addf %3, %4 : vector<2x8x32xf32>
    %c0_6 = arith.constant 0 : index
    %c0_7 = arith.constant 0 : index
    %6 = vector.load %arg4[%c0_6, %c0_7] : memref<2x8xf32, #tpu.memory_space<vmem>>, vector<2x8xf32>
    %c0_8 = arith.constant 0 : index
    %c0_9 = arith.constant 0 : index
    %7 = vector.load %arg6[%c0_8, %c0_9] : memref<2x32xf32, #tpu.memory_space<vmem>>, vector<2x32xf32>
    %8 = vector.shape_cast %6 : vector<2x8xf32> to vector<2x8x1xf32>
    %9 = vector.broadcast %8 : vector<2x8x1xf32> to vector<2x8x32xf32>
    %10 = arith.mulf %5, %9 : vector<2x8x32xf32>
    %cst = arith.constant dense<0.000000e+00> : vector<2x32xf32>
    %11 = vector.multi_reduction <add>, %10, %cst [1] : vector<2x8x32xf32> to vector<2x32xf32>
    %12 = arith.addf %7, %11 : vector<2x32xf32>
    %c0_10 = arith.constant 0 : index
    %c0_11 = arith.constant 0 : index
    %13 = vector.load %arg6[%c0_10, %c0_11] : memref<2x32xf32, #tpu.memory_space<vmem>>, vector<2x32xf32>
    tpu.vector_store %arg6[%c0_10, %c0_11], %12 {strides = array<i32>} : memref<2x32xf32, #tpu.memory_space<vmem>>, vector<2x32xf32>,
    %c0_12 = arith.constant 0 : index
    %c0_13 = arith.constant 0 : index
    %14 = vector.load %arg7[%c0_12, %c0_13] : memref<2x1xf32, #tpu.memory_space<vmem>>, vector<2x1xf32>
    %cst_14 = arith.constant dense<0.000000e+00> : vector<2xf32>
    %15 = vector.multi_reduction <add>, %6, %cst_14 [1] : vector<2x8xf32> to vector<2xf32>
    %16 = vector.shape_cast %15 : vector<2xf32> to vector<2x1xf32>
    %17 = arith.addf %14, %16 : vector<2x1xf32>
    %c0_15 = arith.constant 0 : index
    %c0_16 = arith.constant 0 : index
    %18 = vector.load %arg7[%c0_15, %c0_16] : memref<2x1xf32, #tpu.memory_space<vmem>>, vector<2x1xf32>
    tpu.vector_store %arg7[%c0_15, %c0_16], %17 {strides = array<i32>} : memref<2x1xf32, #tpu.memory_space<vmem>>, vector<2x1xf32>,
    %c0_i32_17 = arith.constant 0 : i32
    %19 = arith.cmpi eq, %arg1, %c0_i32_17 : i32
    %20 = arith.extui %19 : i1 to i32
    %c0_i32_18 = arith.constant 0 : i32
    %21 = arith.cmpi ne, %20, %c0_i32_18 : i32
    scf.if %21 {
      %c0_19 = arith.constant 0 : index
      %c0_20 = arith.constant 0 : index
      %22 = vector.load %arg7[%c0_19, %c0_20] : memref<2x1xf32, #tpu.memory_space<vmem>>, vector<2x1xf32>
      %cst_21 = arith.constant 0.00999999977 : f32
      %23 = vector.broadcast %cst_21 : f32 to vector<2x1xf32>
      %24 = arith.addf %22, %23 : vector<2x1xf32>
      %25 = tpu.reciprocal %24 : vector<2x1xf32> -> vector<2x1xf32>
      %c0_22 = arith.constant 0 : index
      %c0_23 = arith.constant 0 : index
      %26 = vector.load %arg6[%c0_22, %c0_23] : memref<2x32xf32, #tpu.memory_space<vmem>>, vector<2x32xf32>
      %cst_24 = arith.constant 5.000000e-01 : f32
      %27 = vector.broadcast %cst_24 : f32 to vector<2x1xf32>
      %28 = arith.mulf %27, %25 : vector<2x1xf32>
      %29 = vector.broadcast %28 : vector<2x1xf32> to vector<2x32xf32>
      %30 = arith.mulf %26, %29 : vector<2x32xf32>
      %c0_25 = arith.constant 0 : index
      %c0_26 = arith.constant 0 : index
      %31 = vector.load %arg5[%c0_25, %c0_26] : memref<2x32xf32, #tpu.memory_space<vmem>>, vector<2x32xf32>
      tpu.vector_store %arg5[%c0_25, %c0_26], %30 {strides = array<i32>} : memref<2x32xf32, #tpu.memory_space<vmem>>, vector<2x32xf32>,
    } else {
    }
    return
  }
  func.func @transform_0(%arg0: i32, %arg1: i32) -> (i32, i32, i32) {
    %c0_i32 = arith.constant 0 : i32
    %c0_i32_0 = arith.constant 0 : i32
    return %arg0, %arg1, %c0_i32 : i32, i32, i32
  }
  func.func @transform_1(%arg0: i32, %arg1: i32) -> (i32, i32, i32) {
    %c0_i32 = arith.constant 0 : i32
    %c0_i32_0 = arith.constant 0 : i32
    return %arg0, %arg1, %c0_i32 : i32, i32, i32
  }
  func.func @transform_2(%arg0: i32, %arg1: i32) -> (i32, i32) {
    %c0_i32 = arith.constant 0 : i32
    return %arg0, %arg1 : i32, i32
  }
  func.func @transform_3(%arg0: i32, %arg1: i32) -> (i32, i32) {
    %c0_i32 = arith.constant 0 : i32
    %c0_i32_0 = arith.constant 0 : i32
    return %arg0, %c0_i32 : i32, i32
  }
}

</mosaic_0001>

<bundles_post_ra>
// kernel: tpu_custom_call.1
= control target key start
LH: loop header
LB: loop body
LE: loop exit
PB: predicated region body
PF: predicated region fallthrough
CT: control target
= control target key end

     0   :  { %8 = vsyncpa [#allocation5], 0  ;;  %s293_s0 = inlined_call_operand.hbm [shape: f32[2,8,32], index: 0, kind: input, shape index: {}]   ;;  %s294_s1 = inlined_call_operand.hbm [shape: f32[2,8,32], index: 1, kind: input, shape index: {}]   ;;  %s295_s2 = inlined_call_operand.vmem [shape: f32[2,8], index: 2, kind: input, shape index: {}]   ;;  %s296_s3 = inlined_call_operand.hbm [shape: f32[2,32], index: 3, kind: output, shape index: {}]  }
   0x1   :  { %9 = vsyncpa [#allocation8], 0 }
   0x2   :  { %10 = vsyncpa [#allocation6], 0  ;;  %s220_s12 = smov [#allocation4]   ;;  %s148_s16 = scalar_lea.hbm %s293_s0, 256 }
   0x3   :  { %s16_s13 = sshll.u32 %s220_s12, 4  ;;  %p149_p0 = scmp.ne.s32.totalorder %s293_s0, %s148_s16  ;;  %s17_s13 = int_to_ptr.vmem [resolvable:$true] %s16_s13 }
   0x4   :  { %p152_p1 = scmp.lt.u32.totalorder %s148_s16, %s293_s0 }
   0x6   :  { %p154_p2 = pnand %p152_p1, %p149_p0 }
   0x8   :  { %157 = shalt.err (!%p154_p2)
}
   0x9   :  { %s158_s21 = scalar_lea.vmem %s17_s13, 256  ;;  %p163_p4 = scmp.lt.s32.totalorder %s17_s13, %s17_s13 }
   0xa   :  { %p159_p3 = scmp.ne.s32.totalorder %s17_s13, %s158_s21  ;;  %p164_p5 = scmp.lt.s32.totalorder %s158_s21, %s158_s21 }
   0xc   :  { %p165_p6 = por %p164_p5, %p163_p4 }
   0xe   :  { %p166_p7 = pnand %p165_p6, %p159_p3 }
  0x10   :  { %169 = shalt.err (!%p166_p7)
}
  0x11   :  { %s221_s22 = smov 128   ;;  %s222_s23 = smov 8  }
  0x12   :  { %22 = dma.hbm_to_vmem [thread:$0]  %s293_s0, 256, %s17_s13, [#allocation5], %s221_s22, %s221_s22, %s222_s23  }
  0x13   :  { %s223_s26 = smov [#allocation7]   ;;  %s170_s30 = scalar_lea.hbm %s294_s1, 256 }
  0x14   :  { %s28_s27 = sshll.u32 %s223_s26, 4  ;;  %p171_p8 = scmp.ne.s32.totalorder %s294_s1, %s170_s30  ;;  %s29_s27 = int_to_ptr.vmem [resolvable:$true] %s28_s27 }
  0x15   :  { %p174_p9 = scmp.lt.u32.totalorder %s170_s30, %s294_s1 }
  0x17   :  { %p176_p10 = pnand %p174_p9, %p171_p8 }
  0x19   :  { %179 = shalt.err (!%p176_p10)
}
  0x1a   :  { %s180_s8 = scalar_lea.vmem %s29_s27, 256  ;;  %p185_p12 = scmp.lt.s32.totalorder %s29_s27, %s29_s27 }
  0x1b   :  { %p181_p11 = scmp.ne.s32.totalorder %s29_s27, %s180_s8  ;;  %p186_p13 = scmp.lt.s32.totalorder %s180_s8, %s180_s8 }
  0x1d   :  { %p187_p0 = por %p186_p13, %p185_p12 }
  0x1f   :  { %p188_p1 = pnand %p187_p0, %p181_p11 }
  0x21   :  { %191 = shalt.err (!%p188_p1)
}
  0x22   :  { %34 = dma.hbm_to_vmem [thread:$0]  %s294_s1, 256, %s29_s27, [#allocation8], %s221_s22, %s221_s22, %s222_s23  }
  0x23   :  { %214 = dma.done.wait [#allocation5], 256  }
  0x24   :  { %215 = vsyncadd [#allocation5], 4294967040 }
  0x25   :  { %216 = dma.done.wait [#allocation8], 256  }
  0x26   :  { %217 = vsyncadd [#allocation8], 4294967040  ;;  %vm49_vm0 = vcmask 1024   ;;  %v224_v0 = vmov 0.0   ;;  %vm99_vm1 = vcmask 58368   ;;  %v59_v3 = vlaneseq  ;;  %v52_v10 = vld [vmem:[#allocation4 + $0x8] sm:$0xff] }
  0x27   :  { %50 = vst.msk [vmem:[#allocation3] sm:$0x3] %vm49_vm0, %v224_v0  ;;  %v57_v1 = vld [vmem:[%s295_s2] sm:$0x3]  ;;  %v225_v7 = vmov 0   ;;  %vm47_vm2 = vcmask 254976  }
  0x28   :  { %v100_v2 = vsel %vm99_vm1, %v57_v1, 0.0  ;;  %v60_v4 = vshrl.u32 %v59_v3, 7  ;;  %144 = vset.pattern.permute.xlu1 %v225_v7  ;;  %145 = vset.pattern.permute.xlu0 %v225_v7  ;;  %48 = vst.msk [vmem:[#allocation2] sm:$0x3] %vm47_vm2, %v224_v0  ;;  %v54_v11 = vld [vmem:[#allocation7 + $0x8] sm:$0xff]  ;;  %vm75_vm3 = vcmask 261120  }
  0x29   :  { %101 = vadd.xlane.f32.xlu0 %v100_v2  ;;  %v56_v12 = vadd.f32 %v54_v11, %v52_v10  ;;  %v51_v18 = vld [vmem:[#allocation4] sm:$0xff]  ;;  %v53_v19 = vld [vmem:[#allocation7] sm:$0xff]  ;;  %vm92_vm4 = vcmask 1041409   ;;  %s226_s1 = smov [#allocation9]  }
  0x2a   :  { %v68_v5 = vsub.s32 1, %v60_v4  ;;  %v61_v6 = vsub.s32 0, %v60_v4  ;;  %v55_v23 = vadd.f32 %v53_v19, %v51_v18  ;;  %s127_s2 = sshll.u32 %s226_s1, 4  ;;  %s128_s2 = int_to_ptr.vmem [resolvable:$true] %s127_s2 }
  0x2b   :  { %s192_s12 = scalar_lea.vmem %s128_s2, 32  ;;  %p197_p3 = scmp.lt.s32.totalorder %s128_s2, %s128_s2 }
  0x2c   :  { %v69_v8 = vrot.slane %v57_v1, %v68_v5  ;;  %v62_v9 = vrot.slane %v57_v1, %v61_v6  ;;  %p193_p2 = scmp.ne.s32.totalorder %s128_s2, %s192_s12  ;;  %p198_p4 = scmp.lt.s32.totalorder %s192_s12, %s192_s12 }
  0x2e   :  { %71 = vbcast.lane.b32.xlu1 %v69_v8, 256  ;;  %v98_v17 = vld [vmem:[#allocation3] sm:$0x3]  ;;  %p199_p5 = por %p198_p4, %p197_p3 }
  0x2f   :  { %v58_v39 = vld [vmem:[#allocation2] sm:$0x3] }
  0x30   :  { %p200_p6 = pnand %p199_p5, %p193_p2 }
  0x3f   :  { %64 = vbcast.lane.b32.xlu0 %v62_v9, 256 }
  0xa0   :  { %v72_v13 = vpop.permute.xlu1 %71 }
  0xa1   :  { %v74_v14 = vmul.f32 %v72_v13, %v56_v12 }
  0xa3   :  { %v83_v15 = vsel %vm75_vm3, %v74_v14, 0.0 }
  0xa4   :  { %v84_v16 = vrot.slane %v83_v15, 4 }
  0xa6   :  { %v85_v21 = vadd.f32 %v84_v16, %v83_v15 }
  0xa8   :  { %v86_v24 = vrot.slane %v85_v21, 2 }
  0xaa   :  { %v87_v28 = vadd.f32 %v86_v24, %v85_v21 }
  0xac   :  { %v88_v33 = vrot.slane %v87_v28, 1 }
  0xae   :  { %v89_v36 = vadd.f32 %v88_v33, %v87_v28 }
  0xb6   :  { %v102_v20 = vpop.xlane.xlu0 %101 }
  0xb7   :  { %v103_v22 = vadd.f32 %v102_v20, %v98_v17 }
  0xb9   :  { %105 = vst.msk [vmem:[#allocation3] sm:$0x3] %vm49_vm0, %v103_v22 }
  0xba   :  { %v65_v25 = vpop.permute.xlu0 %64 }
  0xbb   :  { %v73_v26 = vmul.f32 %v65_v25, %v55_v23 }
  0xbd   :  { %v76_v27 = vsel %vm75_vm3, %v73_v26, 0.0 }
  0xbe   :  { %v77_v29 = vrot.slane %v76_v27, 4 }
  0xc0   :  { %v109_v30 = vld [vmem:[#allocation3] sm:$0x3]  ;;  %v78_v31 = vadd.f32 %v77_v29, %v76_v27 }
  0xc1   :  { %v110_v32 = vadd.f32 0.01, %v109_v30 }
  0xc2   :  { %v79_v34 = vrot.slane %v78_v31, 2 }
  0xc3   :  { %146 = vrcp.f32 %v110_v32 }
  0xc4   :  { %v80_v35 = vadd.f32 %v79_v34, %v78_v31 }
  0xc6   :  { %v81_v37 = vrot.slane %v80_v35, 1 }
  0xc8   :  { %v82_v38 = vadd.f32 %v81_v37, %v80_v35 }
  0xca   :  { %v93_v40 = vsel %vm92_vm4, %v89_v36, %v82_v38 }
  0xcb   :  { %v95_v41 = vadd.f32 %v93_v40, %v58_v39 }
  0xcd   :  { %v147_v42 = vpop.eup %146  ;;  %97 = vst.msk [vmem:[#allocation2] sm:$0x3] %vm47_vm2, %v95_v41 }
  0xce   :  { %v113_v43 = vmul.f32 0.5, %v147_v42 }
  0xd0   :  { %116 = vperm.xlu1 %144, %v113_v43  }
  0xd4   :  { %v112_v45 = vld [vmem:[#allocation2] sm:$0x3] }
 0x14f   :  { %v117_v44 = vpop.permute.xlu1 %116 }
 0x150   :  { %v119_v46 = vmul.f32 %v117_v44, %v112_v45 }
 0x152   :  { %120 = vst.msk [vmem:[#allocation9] sm:$0x3] %vm47_vm2, %v119_v46 }
 0x153   :  { %203 = shalt.err (!%p200_p6)
}
 0x154   :  { %s204_s15 = scalar_lea.hbm %s296_s3, 32 }
 0x155   :  { %p205_p7 = scmp.ne.s32.totalorder %s296_s3, %s204_s15  ;;  %p208_p8 = scmp.lt.u32.totalorder %s204_s15, %s296_s3 }
 0x157   :  { %p210_p9 = pnand %p208_p8, %p205_p7 }
 0x159   :  { %213 = shalt.err (!%p210_p9)
}
 0x15a   :  { %130 = dma.vmem_to_hbm [thread:$0]  %s128_s2, 32, %s296_s3, [#allocation6]  }
 0x15b   :  { %218 = dma.done.wait [#allocation6], 32  }
 0x15c   :  { %219 = vsyncadd [#allocation6], 4294967264 }
 0x15d   :  { %134 = vsyncpa [#allocation5], 1 }
 0x15e   :  { %135 = vsyncpa [#allocation8], 1 }
 0x15f   :  { %136 = vsyncpa [#allocation6], 1 }

</bundles_post_ra>
